<compile_context>
chip_gen: v5e
topology: v5e:2x2
jax: 0.10.0
libtpu: 0.0.40
codegen_flags: <defaults>
</compile_context>

<pallas_src>
import functools
import math

import jax
import jax.numpy as jnp
from jax.experimental import pallas as pl
from jax.experimental.pallas import tpu as pltpu


# ----------------------------------------------------------------------------
# Small helpers
# ----------------------------------------------------------------------------
def _round_up(n: int, m: int) -> int:
    return ((n + m - 1) // m) * m


def _sublane_multiple(dtype) -> int:
    # f32 -> 8, bf16 -> 16, int8/fp8 -> 32 (second-minor packing granularity).
    return max(8, 32 // jnp.dtype(dtype).itemsize)


def _tpu_caps():
    """Best-effort (tensorcores_per_chip, physical_vmem_bytes_per_core)."""
    kind = ""
    try:
        dev = jax.devices()[0]
        if dev.platform == "tpu":
            kind = str(dev.device_kind).lower()
    except Exception:
        pass
    if "v7" in kind or "7x" in kind:
        return 2, 64 * 1024 * 1024            # v7x: 2 TensorCores, 64 MiB VMEM per core
    if "v4" in kind or "v5" in kind or "v6" in kind:
        return 1, 128 * 1024 * 1024
    return 1, 64 * 1024 * 1024                # unknown chip: conservative on VMEM


def _vmem_limit_bytes(per_step_bytes: int, vmem_cap: int) -> int:
    # in + out (+ pe) blocks are double-buffered by the pipeline; add headroom, clamp to
    # ~3/4 of physical VMEM (<= 48 MiB on v7x, <= 96 MiB on v5e/v6e).
    need = 2 * per_step_bytes + (4 << 20)
    return int(min(max(need, 32 << 20), (vmem_cap * 3) // 4))


# ----------------------------------------------------------------------------
# Buffer setup (init-time; mirrors PyTorch __init__ / register_buffer).
# Stored as (max_len, 1, d_model) in the target dtype so forward needs no cast.
# ----------------------------------------------------------------------------
def make_pe_table(d_model: int, max_len: int = 5000, dtype=jnp.float32):
    position = jnp.arange(max_len, dtype=jnp.float32)[:, None]                     # (max_len, 1)
    div_term = jnp.exp(
        jnp.arange(0, d_model, 2, dtype=jnp.float32) * (-math.log(10000.0) / d_model)
    )                                                                              # (ceil(D/2),)
    args = position * div_term                                                     # (max_len, ceil(D/2))
    pe = jnp.zeros((max_len, d_model), jnp.float32)
    pe = pe.at[:, 0::2].set(jnp.sin(args))
    pe = pe.at[:, 1::2].set(jnp.cos(args)[:, : d_model // 2])                      # odd d_model safe
    return pe[:, None, :].astype(dtype)                                            # (max_len, 1, D)


# ----------------------------------------------------------------------------
# Fused path: dense (S*B, D) blocks, PE generated in-kernel (one sin per element).
# ----------------------------------------------------------------------------
def _pe_rows(pos, d, d_model, out_dtype):
    """Sinusoid rows for float32 positions `pos` of shape (T, 1); returns (T, d).

    cos(x) = sin(x + pi/2) -> single transcendental per element; the inverse-frequency
    exp() is computed once on a (1, d) row and broadcast.
    """
    col = jax.lax.broadcasted_iota(jnp.int32, (1, d), 1)                           # (1, d)
    inv_freq = jnp.exp((col >> 1).astype(jnp.float32)
                       * jnp.float32(-2.0 * math.log(10000.0) / d_model))          # (1, d)
    phase = (col & 1).astype(jnp.float32) * jnp.float32(math.pi / 2.0)             # (1, d)
    return jnp.sin(pos * inv_freq + phase).astype(out_dtype)                       # (T, d)


def _fused_pe_kernel(x_ref, o_ref, *, batch, d_model):
    rows, d = x_ref.shape                               # static block shape; rows % batch == 0
    # Exact int32 block-start position; only small block-local indices go through f32, so
    # positions stay exact for arbitrarily long seq*batch.
    pos0 = (pl.program_id(0) * (rows // batch)).astype(jnp.float32)
    local = jax.lax.broadcasted_iota(jnp.int32, (rows, 1), 0).astype(jnp.float32)  # (rows, 1)
    pos = pos0 + jnp.floor((local + 0.5) * jnp.float32(1.0 / batch))               # row // batch
    o_ref[...] = x_ref[...] + _pe_rows(pos, d, d_model, o_ref.dtype)


def positional_encoding_forward_fused(x, *, target_tile_bytes=4 << 20, donate_x=False):
    """x: (S, B, D). Returns x + pe[:S] with the sinusoid generated in-kernel.

    x is viewed as a dense (S*B, D) slab: contiguous (free) reshape, no sublane padding for
    small/odd batch, and zero pe HBM traffic.
    """
    S, B, D = x.shape
    total_rows = S * B
    itemsize = jnp.dtype(x.dtype).itemsize
    sub = _sublane_multiple(x.dtype)
    ntc, vmem_cap = _tpu_caps()

    # TODO(synk): for D % 128 != 0 a fully flattened (N, 128k) view would make stores
    # lane-dense too; kept at (S*B, D) (dense sublanes, lanes pad) for simpler index math.
    row_bytes = _round_up(D, 128) * itemsize                       # VMEM bytes per flattened row
    granule = (sub * B) // math.gcd(sub, B)                        # lcm: (8,·) rule + exact pos0
    budget_rows = max(1, target_tile_bytes // row_bytes)
    row_tile = max(granule, (budget_rows // granule) * granule)
    if row_tile >= total_rows:
        if ntc >= 2 and total_rows >= 2 * granule:
            row_tile = _round_up(pl.cdiv(total_rows, 2), granule)  # one half per TensorCore
        else:
            row_tile = total_rows                                  # single step on 1-TC chips
    grid = (pl.cdiv(total_rows, row_tile),)

    x_flat = x.reshape(total_rows, D)                              # contiguous -> free reshape
    kernel = functools.partial(_fused_pe_kernel, batch=B, d_model=D)
    per_step_bytes = 2 * row_tile * row_bytes                      # in + out block
    out_flat = pl.pallas_call(
        kernel,
        out_shape=jax.ShapeDtypeStruct((total_rows, D), x.dtype),
        grid_spec=pltpu.PrefetchScalarGridSpec(
            num_scalar_prefetch=0,
            grid=grid,
            in_specs=[pl.BlockSpec((row_tile, D), lambda i: (i, 0))],
            out_specs=pl.BlockSpec((row_tile, D), lambda i: (i, 0)),
        ),
        compiler_params=pltpu.CompilerParams(
            dimension_semantics=("parallel",),
            vmem_limit_bytes=_vmem_limit_bytes(per_step_bytes, vmem_cap),
        ),
        # Only pays off when the caller actually donates x; otherwise XLA inserts a copy.
        input_output_aliases=({0: 0} if donate_x else {}),
    )(x_flat)
    return out_flat.reshape(S, B, D)


# ----------------------------------------------------------------------------
# Table path: precomputed register_buffer-style table, indexed directly via BlockSpec.
# Preferred for sublane/lane-dense shapes (B % 8 == 0 and D % 128 == 0), where it is a
# near pure mem-bound add with no trig (important on v7x: HBM grew, the VPU did not).
# ----------------------------------------------------------------------------
def _table_pe_kernel(x_ref, pe_ref, o_ref):
    # (seq_tile, B, D) + (seq_tile, 1, D): broadcast over batch, exactly like PyTorch.
    o_ref[...] = x_ref[...] + pe_ref[...]


def positional_encoding_forward_table(x, pe_table, *, target_tile_bytes=4 << 20, donate_x=False):
    """x: (S, B, D); pe_table: (max_len, 1, D) buffer from make_pe_table."""
    S, B, D = x.shape
    if pe_table.ndim == 2:                     # accept a squeezed (max_len, D) table too
        pe_table = pe_table[:, None, :]
    assert pe_table.shape[0] >= S and pe_table.shape[2] == D, "pe table too small / wrong d_model"
    if pe_table.dtype != x.dtype:
        # Correctness fallback; pre-cast the buffer at init (make_pe_table(dtype=...)) so this
        # per-call cast copy never happens in practice.
        pe_table = pe_table.astype(x.dtype)

    itemsize = jnp.dtype(x.dtype).itemsize
    sub = _sublane_multiple(x.dtype)
    ntc, vmem_cap = _tpu_caps()

    # TODO(synk): a 2D (max_len, D) table block would avoid the 8x sublane padding on the pe
    # window; kept as the (seq_tile, 1, D) block whose broadcast-add lowering is proven.
    x_step = _round_up(B, sub) * _round_up(D, 128) * itemsize      # x bytes per seq position
    pe_step = sub * _round_up(D, 128) * itemsize                   # pe block pads its unit dim
    seq_tile = max(1, target_tile_bytes // x_step)
    if seq_tile >= S:
        seq_tile = pl.cdiv(S, 2) if (ntc >= 2 and S >= 2) else S   # split only with 2 TCs
    seq_tile = min(seq_tile, S)
    grid = (pl.cdiv(S, seq_tile),)

    per_step_bytes = seq_tile * (2 * x_step + pe_step)
    return pl.pallas_call(
        _table_pe_kernel,
        out_shape=jax.ShapeDtypeStruct((S, B, D), x.dtype),
        grid_spec=pltpu.PrefetchScalarGridSpec(
            num_scalar_prefetch=0,
            grid=grid,
            in_specs=[
                pl.BlockSpec((seq_tile, B, D), lambda i: (i, 0, 0)),
                pl.BlockSpec((seq_tile, 1, D), lambda i: (i, 0, 0)),
            ],
            out_specs=pl.BlockSpec((seq_tile, B, D), lambda i: (i, 0, 0)),
        ),
        compiler_params=pltpu.CompilerParams(
            dimension_semantics=("parallel",),
            vmem_limit_bytes=_vmem_limit_bytes(per_step_bytes, vmem_cap),
        ),
        input_output_aliases=({0: 0} if donate_x else {}),
    )(x, pe_table)


# ----------------------------------------------------------------------------
# Module forward (dispatcher).
# ----------------------------------------------------------------------------
def positional_encoding_forward(x, pe_table=None, *, fuse=None, donate_x=False):
    """x + pe[:x.shape[0]] for x of shape (seq_len, batch, d_model).

    Path selection (override with fuse=True/False):
      * table path  -- batch sublane-dense (B % 8|16 == 0), d_model lane-dense (D % 128 == 0)
                       and a matching-dtype table is available.
      * fused path  -- everything else (small/odd batch, narrow d_model, or no table).
    Note: the fused path regenerates the sinusoid in f32 in-kernel; it matches the
    register_buffer table to ~1e-4, not bit-exactly.
    """
    S, B, D = x.shape
    sub = _sublane_multiple(x.dtype)
    table_ok = (
        pe_table is not None
        and pe_table.shape[0] >= S
        and pe_table.shape[-1] == D
        and pe_table.dtype == x.dtype
    )
    dense_layout = (B % sub == 0) and (D % 128 == 0)
    if fuse is None:
        fuse = not (table_ok and dense_layout)
    if fuse:
        return positional_encoding_forward_fused(x, donate_x=donate_x)
    assert pe_table is not None, "table path requires a pe_table from make_pe_table()"
    return positional_encoding_forward_table(x, pe_table, donate_x=donate_x)


if __name__ == "__main__":
    # Small deterministic shapes consistent with the module: x is (seq, batch, d_model).
    D = 32
    max_len = 64                                    # module default is 5000; equivalent for S <= 64
    pe_buf = make_pe_table(D, max_len=max_len)      # (max_len, 1, D) register_buffer equivalent

    def ref_fn(x, buf):                             # mirrors PyTorch: x + self.pe[:x.size(0)]
        return x + buf[: x.shape[0]]

    # 1) Small batch / narrow d_model: fused flat path by default; also force the table path.
    x1 = jax.random.normal(jax.random.PRNGKey(0), (8, 2, D), dtype=jnp.float32)
    r1 = ref_fn(x1, pe_buf)
    o1f = jax.block_until_ready(positional_encoding_forward(x1))                        # fused
    o1t = jax.block_until_ready(positional_encoding_forward(x1, pe_buf, fuse=False))    # table
    assert o1f.shape == x1.shape and o1f.dtype == x1.dtype
    assert jnp.allclose(o1t, r1, atol=1e-6, rtol=1e-6), "table path mismatch"
    assert jnp.allclose(o1f, r1, atol=2e-4, rtol=2e-4), "fused path mismatch"

    # 2) Ragged seq / odd batch (exercises cdiv grid + masked boundary stores).
    x2 = jax.random.normal(jax.random.PRNGKey(1), (5, 3, D), dtype=jnp.float32)
    r2 = ref_fn(x2, pe_buf)
    o2f = jax.block_until_ready(positional_encoding_forward(x2))
    o2t = jax.block_until_ready(positional_encoding_forward(x2, pe_buf, fuse=False))
    assert jnp.allclose(o2t, r2, atol=1e-6, rtol=1e-6), "table path mismatch (ragged)"
    assert jnp.allclose(o2f, r2, atol=2e-4, rtol=2e-4), "fused path mismatch (ragged)"

    # 3) Sublane-dense batch + lane-dense d_model: dispatcher picks the table path.
    D3 = 128
    pe_buf3 = make_pe_table(D3, max_len=max_len)
    x3 = jax.random.normal(jax.random.PRNGKey(2), (16, 8, D3), dtype=jnp.float32)
    r3 = ref_fn(x3, pe_buf3)
    o3 = jax.block_until_ready(positional_encoding_forward(x3, pe_buf3))                # table
    o3f = jax.block_until_ready(positional_encoding_forward(x3, pe_buf3, fuse=True))    # fused
    assert jnp.allclose(o3, r3, atol=1e-6, rtol=1e-6), "table path mismatch (dense layout)"
    assert jnp.allclose(o3f, r3, atol=2e-4, rtol=2e-4), "fused path mismatch (dense layout)"

    print("KERNEL_OK")
</pallas_src>

<mosaic_0001>
module attributes {stable_mosaic.version = 11 : i64} {
  func.func @_fused_pe_kernel(%arg0: i32, %arg1: memref<16x32xf32, #tpu.memory_space<vmem>>, %arg2: memref<16x32xf32, #tpu.memory_space<vmem>>) attributes {dimension_semantics = [#tpu.dimension_semantics<parallel>], iteration_bounds = array<i64: 1>, scalar_prefetch = 0 : i64, scratch_operands = 0 : i64, tpu.core_type = #tpu.core_type<tc>, window_params = [{transform_indices = @transform_0, window_bounds = array<i64: 16, 32>}, {transform_indices = @transform_1, window_bounds = array<i64: 16, 32>}]} {
    %c8_i32 = arith.constant 8 : i32
    %0 = arith.muli %arg0, %c8_i32 : i32
    %1 = arith.sitofp %0 : i32 to f32
    %2 = tpu.iota {dimensions = array<i32: 0>} : vector<16x1xi32>
    %3 = arith.sitofp %2 : vector<16x1xi32> to vector<16x1xf32>
    %cst = arith.constant 5.000000e-01 : f32
    %4 = vector.broadcast %cst : f32 to vector<16x1xf32>
    %5 = arith.addf %3, %4 : vector<16x1xf32>
    %cst_0 = arith.constant 5.000000e-01 : f32
    %6 = vector.broadcast %cst_0 : f32 to vector<16x1xf32>
    %7 = arith.mulf %5, %6 : vector<16x1xf32>
    %8 = math.floor %7 : vector<16x1xf32>
    %9 = vector.broadcast %1 : f32 to vector<16x1xf32>
    %10 = arith.addf %9, %8 : vector<16x1xf32>
    %c0 = arith.constant 0 : index
    %c0_1 = arith.constant 0 : index
    %11 = vector.load %arg1[%c0, %c0_1] : memref<16x32xf32, #tpu.memory_space<vmem>>, vector<16x32xf32>
    %12 = tpu.iota {dimensions = array<i32: 1>} : vector<1x32xi32>
    %c1_i32 = arith.constant 1 : i32
    %13 = vector.broadcast %c1_i32 : i32 to vector<1x32xi32>
    %14 = arith.shrsi %12, %13 : vector<1x32xi32>
    %15 = arith.sitofp %14 : vector<1x32xi32> to vector<1x32xf32>
    %cst_2 = arith.constant -0.575646281 : f32
    %16 = vector.broadcast %cst_2 : f32 to vector<1x32xf32>
    %17 = arith.mulf %15, %16 : vector<1x32xf32>
    %18 = math.exp %17 : vector<1x32xf32>
    %c1_i32_3 = arith.constant 1 : i32
    %19 = vector.broadcast %c1_i32_3 : i32 to vector<1x32xi32>
    %20 = arith.andi %12, %19 : vector<1x32xi32>
    %21 = arith.sitofp %20 : vector<1x32xi32> to vector<1x32xf32>
    %cst_4 = arith.constant 1.57079637 : f32
    %22 = vector.broadcast %cst_4 : f32 to vector<1x32xf32>
    %23 = arith.mulf %21, %22 : vector<1x32xf32>
    %24 = vector.broadcast %10 : vector<16x1xf32> to vector<16x32xf32>
    %25 = vector.broadcast %18 : vector<1x32xf32> to vector<16x32xf32>
    %26 = arith.mulf %24, %25 : vector<16x32xf32>
    %27 = vector.broadcast %23 : vector<1x32xf32> to vector<16x32xf32>
    %28 = arith.addf %26, %27 : vector<16x32xf32>
    %29 = math.sin %28 : vector<16x32xf32>
    %30 = arith.addf %11, %29 : vector<16x32xf32>
    %c0_5 = arith.constant 0 : index
    %c0_6 = arith.constant 0 : index
    %31 = vector.load %arg2[%c0_5, %c0_6] : memref<16x32xf32, #tpu.memory_space<vmem>>, vector<16x32xf32>
    tpu.vector_store %arg2[%c0_5, %c0_6], %30 {strides = array<i32>} : memref<16x32xf32, #tpu.memory_space<vmem>>, vector<16x32xf32>,
    return
  }
  func.func @transform_0(%arg0: i32) -> (i32, i32) {
    %c0_i32 = arith.constant 0 : i32
    %c0_i32_0 = arith.constant 0 : i32
    return %arg0, %c0_i32 : i32, i32
  }
  func.func @transform_1(%arg0: i32) -> (i32, i32) {
    %c0_i32 = arith.constant 0 : i32
    %c0_i32_0 = arith.constant 0 : i32
    return %arg0, %c0_i32 : i32, i32
  }
}

</mosaic_0001>

<bundles_post_ra>
// kernel: tpu_custom_call.1
= control target key start
LH: loop header
LB: loop body
LE: loop exit
PB: predicated region body
PF: predicated region fallthrough
CT: control target
= control target key end

     0   :  { %6 = vsyncpa [#allocation3], 0  ;;  %s670_s0 = inlined_call_operand.hbm [shape: f32[16,32], index: 0, kind: input, shape index: {}]   ;;  %s671_s1 = inlined_call_operand.hbm [shape: f32[16,32], index: 1, kind: output, shape index: {}]  }
   0x1   :  { %7 = vsyncpa [#allocation4], 0  ;;  %s12_s8 = sshll.u32 %s670_s0, 4  ;;  %s462_s9 = smov [#allocation2]   ;;  %s13_s8 = int_to_ptr.hbm [resolvable:$true] %s12_s8 }
   0x2   :  { %s14_s10 = sshll.u32 %s462_s9, 4  ;;  %s463_s11 = smov 128   ;;  %s15_s10 = int_to_ptr.vmem [resolvable:$true] %s14_s10 }
   0x3   :  { %s464_s12 = smov 8  }
   0x4   :  { %20 = dma.hbm_to_vmem [thread:$0]  %s13_s8, 256, %s15_s10, [#allocation3], %s463_s11, %s463_s11, %s464_s12  }
   0x5   :  { %458 = dma.done.wait [#allocation3], 256  }
   0x6   :  { %459 = vsyncadd [#allocation3], 4294967040  ;;  %v27_v0 = vlaneseq  ;;  %v465_v45 = vmov 683565275   ;;  %v466_v47 = vmov 2475754826  }
   0x7   :  { %v467_v49 = vmov 2131351028   ;;  %v468_v51 = vmov 2102212464   ;;  %v469_v53 = vmov 920167782  }
   0x8   :  { %v28_v1 = vshrl.u32 %v27_v0, 7  ;;  %v44_v2 = vand.u32 127, %v27_v0  ;;  %v470_v62 = vmov 1326507024   ;;  %s472_s0 = smov [#allocation5]   ;;  %s378_s16 = sshll.u32 %s671_s1, 4  ;;  %s379_s16 = int_to_ptr.hbm [resolvable:$true] %s378_s16 }
   0x9   :  { %s376_s13 = sshll.u32 %s472_s0, 4  ;;  %s377_s13 = int_to_ptr.vmem [resolvable:$true] %s376_s13 }
   0xa   :  { %v29_v3 = vadd.s32 8, %v28_v1  ;;  %v30_v4 = vcvt.s32.f32 %v28_v1  ;;  %v45_v5 = vshra.s32 %v44_v2, 1  ;;  %v50_v11 = vand.u32 1, %v44_v2 }
   0xc   :  { %v31_v6 = vcvt.s32.f32 %v29_v3  ;;  %v46_v7 = vcvt.s32.f32 %v45_v5  ;;  %v32_v8 = vadd.f32 0.5, %v30_v4  ;;  %v51_v15 = vcvt.s32.f32 %v50_v11 }
   0xe   :  { %v33_v9 = vadd.f32 0.5, %v31_v6  ;;  %v47_v10 = vmul.f32 -0.5756463, %v46_v7  ;;  %v34_v13 = vmul.f32 0.5, %v32_v8  ;;  %v52_v18 = vmul.f32 1.5707964, %v51_v15 }
  0x10   :  { %v48_v12 = vmul.f32 1.442695, %v47_v10  ;;  %v35_v14 = vmul.f32 0.5, %v33_v9  ;;  %v36_v16 = vfloor.f32 %v34_v13 }
  0x12   :  { %408 = vpow2.f32 %v48_v12  ;;  %v37_v17 = vfloor.f32 %v35_v14 }
  0x18   :  { %v409_v19 = vpop.eup %408 }
  0x19   :  { %v53_v20 = vmul.f32 %v409_v19, %v36_v16  ;;  %v54_v21 = vmul.f32 %v409_v19, %v37_v17 }
  0x1b   :  { %v489_v22 = vadd.f32 %v53_v20, %v52_v18  ;;  %v491_v23 = vadd.f32 %v54_v21, %v52_v18 }
  0x1d   :  { %v57_v24 = vand.u32 2147483647, %v489_v22  ;;  %v60_v25 = vand.u32 2139095040, %v489_v22  ;;  %v212_v26 = vand.u32 2147483647, %v491_v23  ;;  %v215_v27 = vand.u32 2139095040, %v491_v23 }
  0x1f   :  { %v61_v28 = vshrl.u32 %v60_v25, 23  ;;  %v64_v29 = vand.u32 8388607, %v57_v24  ;;  %v216_v30 = vshrl.u32 %v215_v27, 23  ;;  %v219_v34 = vand.u32 8388607, %v212_v26 }
  0x21   :  { %v391_v31 = vadd.s32 4294967169, %v61_v28  ;;  %v65_v32 = vor.u32 8388608, %v64_v29  ;;  %v394_v33 = vadd.s32 4294967169, %v216_v30  ;;  %v220_v39 = vor.u32 8388608, %v219_v34 }
  0x23   :  { %v67_v35 = vadd.s32 1, %v391_v31  ;;  %v222_v36 = vadd.s32 1, %v394_v33  ;;  %v501_v38 = vshll.u32 %v65_v32, 8  ;;  %v511_v56 = vshll.u32 %v220_v39, 8 }
  0x25   :  { %vm68_vm0 = vcmp.gt.s32.totalorder %v67_v35, 0  ;;  %vm223_vm1 = vcmp.gt.s32.totalorder %v222_v36, 0  ;;  %v106_v55 = vand.u32 65535, %v501_v38  ;;  %v107_v60 = vshrl.u32 %v501_v38, 16 }
  0x26   :  { %v69_v37 = vsel %vm68_vm0, %v67_v35, 0  ;;  %v224_v41 = vsel %vm223_vm1, %v222_v36, 0 }
  0x27   :  { %v71_v40 = vand.u32 31, %v69_v37  ;;  %v503_v42 = vshrl.u32 %v69_v37, 5  ;;  %v505_v43 = vand.u32 31, %v224_v41  ;;  %v529_v9 = vshrl.u32 %v224_v41, 5 }
  0x29   :  { %v72_v44 = vsub.s32 32, %v71_v40  ;;  %v74_v46 = vshll.u32 %v465_v45, %v71_v40  ;;  %v77_v48 = vshll.u32 %v466_v47, %v71_v40  ;;  %v80_v50 = vshll.u32 %v467_v49, %v71_v40 }
  0x2a   :  { %v83_v52 = vshll.u32 %v468_v51, %v71_v40  ;;  %v86_v54 = vshll.u32 %v469_v53, %v71_v40  ;;  %vm89_vm2 = vcmp.lt.s32.totalorder %v503_v42, 1  ;;  %vm92_vm3 = vcmp.lt.s32.totalorder %v503_v42, 4 }
  0x2b   :  { %v75_v57 = vshrl.u32 %v466_v47, %v72_v44  ;;  %v78_v58 = vshrl.u32 %v467_v49, %v72_v44  ;;  %v81_v59 = vshrl.u32 %v468_v51, %v72_v44  ;;  %v84_v61 = vshrl.u32 %v469_v53, %v72_v44 }
  0x2c   :  { %v87_v63 = vshrl.u32 %v470_v62, %v72_v44  ;;  %v520_v3 = vsub.s32 32, %v505_v43  ;;  %v73_v4 = vshrl.u32 %v465_v45, %v72_v44  ;;  %vm91_vm4 = vcmp.lt.s32.totalorder %v503_v42, 3 }
  0x2d   :  { %v76_v0 = vor.u32 %v75_v57, %v74_v46  ;;  %v79_v1 = vor.u32 %v78_v58, %v77_v48  ;;  %v82_v2 = vor.u32 %v81_v59, %v80_v50  ;;  %v85_v5 = vor.u32 %v84_v61, %v83_v52 }
  0x2e   :  { %v88_v6 = vor.u32 %v87_v63, %v86_v54  ;;  %vm90_vm5 = vcmp.lt.s32.totalorder %v503_v42, 2  ;;  %v229_v12 = vshll.u32 %v465_v45, %v505_v43  ;;  %v232_v13 = vshll.u32 %v466_v47, %v505_v43 }
  0x2f   :  { %v97_v7 = vsel %vm89_vm2, %v76_v0, %v79_v1  ;;  %v101_v8 = vsel %vm89_vm2, %v79_v1, %v82_v2  ;;  %v98_v10 = vsel %vm92_vm3, %v85_v5, 920167782  ;;  %v94_v14 = vsel %vm92_vm3, %v82_v2, 2102212464 }
  0x30   :  { %v102_v11 = vsel %vm92_vm3, %v88_v6, 1326507024  ;;  %v99_v15 = vsel %vm91_vm4, %v82_v2, %v98_v10  ;;  %v230_v17 = vshrl.u32 %v466_v47, %v520_v3  ;;  %v93_v18 = vsel %vm89_vm2, %v73_v4, %v76_v0 }
  0x31   :  { %v103_v16 = vsel %vm91_vm4, %v85_v5, %v102_v11  ;;  %v100_v19 = vsel %vm90_vm5, %v97_v7, %v99_v15  ;;  %v233_v21 = vshrl.u32 %v467_v49, %v520_v3  ;;  %v95_v30 = vsel %vm91_vm4, %v79_v1, %v94_v14 }
  0x32   :  { %v104_v20 = vsel %vm90_vm5, %v101_v8, %v103_v16  ;;  %v130_v28 = vand.u32 65535, %v100_v19  ;;  %v131_v29 = vshrl.u32 %v100_v19, 16  ;;  %v554_v31 = vor.u32 %v230_v17, %v229_v12 }
  0x33   :  { %v108_v25 = vand.u32 65535, %v104_v20  ;;  %v109_v27 = vshrl.u32 %v104_v20, 16  ;;  %v556_v32 = vor.u32 %v233_v21, %v232_v13  ;;  %v235_v33 = vshll.u32 %v467_v49, %v505_v43 }
  0x34   :  { %v236_v37 = vshrl.u32 %v468_v51, %v520_v3  ;;  %v132_v40 = vmul.u32 %v130_v28, %v106_v55  ;;  %v133_v41 = vmul.u32 %v131_v29, %v106_v55  ;;  %v134_v44 = vmul.u32 %v130_v28, %v107_v60 }
  0x35   :  { %v110_v34 = vmul.u32 %v108_v25, %v106_v55  ;;  %v111_v35 = vmul.u32 %v109_v27, %v106_v55  ;;  %v112_v36 = vmul.u32 %v108_v25, %v107_v60  ;;  %v113_v39 = vmul.u32 %v109_v27, %v107_v60 }
  0x36   :  { %v135_v50 = vmul.u32 %v131_v29, %v107_v60  ;;  %v136_v54 = vshll.u32 %v133_v41, 16  ;;  %v137_v57 = vshrl.u32 %v133_v41, 16  ;;  %v138_v58 = vshll.u32 %v134_v44, 16 }
  0x37   :  { %v114_v46 = vshll.u32 %v111_v35, 16  ;;  %v115_v47 = vshrl.u32 %v111_v35, 16  ;;  %v116_v48 = vshll.u32 %v112_v36, 16  ;;  %v117_v52 = vshrl.u32 %v112_v36, 16 }
  0x38   :  { %v139_v59 = vshrl.u32 %v134_v44, 16  ;;  %v238_v61 = vshll.u32 %v468_v51, %v505_v43  ;;  %v471_v63 = vmov 0   ;;  %vm140_vm7 = vc.u32 %v132_v40, %v136_v54 }
  0x39   :  { %vm118_vm6 = vc.u32 %v110_v34, %v114_v46  ;;  %v120_v49 = vadd.s32 %v114_v46, %v110_v34  ;;  %v142_v55 = vadd.s32 %v136_v54, %v132_v40  ;;  %v239_v1 = vshrl.u32 %v469_v53, %v520_v3 }
  0x3a   :  { %v119_v0 = vsel %vm118_vm6, 1, %v471_v63  ;;  %v141_v60 = vsel %vm140_vm7, 1, %v471_v63  ;;  %v241_v4 = vshll.u32 %v469_v53, %v505_v43  ;;  %v237_v51 = vor.u32 %v236_v37, %v235_v33 }
  0x3b   :  { %v121_v2 = vadd.s32 %v119_v0, %v113_v39  ;;  %vm122_vm8 = vc.u32 %v120_v49, %v116_v48  ;;  %v143_v6 = vadd.s32 %v141_v60, %v135_v50  ;;  %vm144_vm9 = vc.u32 %v142_v55, %v138_v58 }
  0x3c   :  { %v123_v5 = vsel %vm122_vm8, 1, %v471_v63  ;;  %v145_v8 = vsel %vm144_vm9, 1, %v471_v63  ;;  %v240_v10 = vor.u32 %v239_v1, %v238_v61  ;;  %v242_v11 = vshrl.u32 %v470_v62, %v520_v3 }
  0x3d   :  { %v125_v7 = vadd.s32 %v123_v5, %v121_v2  ;;  %v573_v12 = vadd.s32 %v142_v55, %v138_v58  ;;  %v147_v13 = vadd.s32 %v145_v8, %v143_v6  ;;  %vm244_vm10 = vcmp.lt.s32.totalorder %v529_v9, 1 }
  0x3e   :  { %vm246_vm11 = vcmp.lt.s32.totalorder %v529_v9, 3  ;;  %v243_v53 = vor.u32 %v242_v11, %v241_v4  ;;  %vm245_vm12 = vcmp.lt.s32.totalorder %v529_v9, 2  ;;  %vm247_vm13 = vcmp.lt.s32.totalorder %v529_v9, 4 }
  0x3f   :  { %v126_v43 = vadd.s32 %v125_v7, %v115_v47  ;;  %v96_v14 = vsel %vm90_vm5, %v93_v18, %v95_v30  ;;  %v148_v15 = vadd.s32 %v147_v13, %v137_v57  ;;  %v252_v62 = vsel %vm244_vm10, %v554_v31, %v556_v32 }
  0x40   :  { %v253_v16 = vsel %vm247_vm13, %v240_v10, 920167782  ;;  %v256_v20 = vsel %vm244_vm10, %v556_v32, %v237_v51  ;;  %v261_v42 = vand.u32 65535, %v511_v56  ;;  %v257_v25 = vsel %vm247_vm13, %v243_v53, 1326507024 }
  0x41   :  { %v587_v17 = vadd.s32 %v126_v43, %v117_v52  ;;  %v254_v19 = vsel %vm246_vm11, %v237_v51, %v253_v16  ;;  %v149_v18 = vadd.s32 %v148_v15, %v139_v59  ;;  %v262_v27 = vshrl.u32 %v511_v56, 16 }
  0x42   :  { %v255_v21 = vsel %vm245_vm12, %v252_v62, %v254_v19  ;;  %v150_v28 = vmul.u32 %v501_v38, %v96_v14  ;;  %v258_v29 = vsel %vm246_vm11, %v240_v10, %v257_v25  ;;  %v228_v40 = vshrl.u32 %v465_v45, %v520_v3 }
  0x43   :  { %vm152_vm14 = vc.u32 %v587_v17, %v573_v12  ;;  %v285_v30 = vand.u32 65535, %v255_v21  ;;  %v153_v33 = vadd.s32 1, %v149_v18  ;;  %v259_v34 = vsel %vm245_vm12, %v256_v20, %v258_v29 }
  0x44   :  { %v286_v35 = vshrl.u32 %v255_v21, 16  ;;  %v263_v36 = vand.u32 65535, %v259_v34  ;;  %v264_v37 = vshrl.u32 %v259_v34, 16  ;;  %v249_v57 = vsel %vm247_vm13, %v237_v51, 2102212464 }
  0x45   :  { %v154_v39 = vsel %vm152_vm14, %v153_v33, %v149_v18  ;;  %v289_v38 = vmul.u32 %v285_v30, %v262_v27  ;;  %v287_v48 = vmul.u32 %v285_v30, %v261_v42  ;;  %v248_v59 = vsel %vm244_vm10, %v228_v40, %v554_v31 }
  0x46   :  { %v288_v41 = vmul.u32 %v286_v35, %v261_v42  ;;  %v155_v44 = vadd.s32 %v154_v39, %v150_v28  ;;  %v265_v46 = vmul.u32 %v263_v36, %v261_v42  ;;  %v266_v47 = vmul.u32 %v264_v37, %v261_v42 }
  0x47   :  { %v267_v50 = vmul.u32 %v263_v36, %v262_v27  ;;  %v268_v58 = vmul.u32 %v264_v37, %v262_v27  ;;  %v290_v45 = vmul.u32 %v286_v35, %v262_v27  ;;  %v293_v3 = vshll.u32 %v289_v38, 16 }
  0x48   :  { %v291_v52 = vshll.u32 %v288_v41, 16  ;;  %v156_v54 = vadd.s32 536870912, %v155_v44  ;;  %v269_v49 = vshll.u32 %v266_v47, 16  ;;  %v250_v1 = vsel %vm246_vm11, %v556_v32, %v249_v57 }
  0x49   :  { %v271_v61 = vshll.u32 %v267_v50, 16  ;;  %v270_v31 = vshrl.u32 %v266_v47, 16  ;;  %v292_v7 = vshrl.u32 %v288_v41, 16  ;;  %v272_v11 = vshrl.u32 %v267_v50, 16 }
  0x4a   :  { %v614_v0 = vshrl.u32 %v156_v54, 30  ;;  %vm273_vm15 = vc.u32 %v265_v46, %v269_v49  ;;  %v275_v55 = vadd.s32 %v269_v49, %v265_v46  ;;  %vm295_vm0 = vc.u32 %v287_v48, %v291_v52 }
  0x4b   :  { %v274_v2 = vsel %vm273_vm15, 1, %v471_v63  ;;  %v296_v60 = vsel %vm295_vm0, 1, %v471_v63  ;;  %v297_v4 = vadd.s32 %v291_v52, %v287_v48  ;;  %v294_v43 = vshrl.u32 %v289_v38, 16 }
  0x4c   :  { %v158_v5 = vshll.u32 %v614_v0, 30  ;;  %v276_v6 = vadd.s32 %v274_v2, %v268_v58  ;;  %vm277_vm1 = vc.u32 %v275_v55, %v271_v61  ;;  %v298_v8 = vadd.s32 %v296_v60, %v290_v45 }
  0x4d   :  { %v278_v51 = vsel %vm277_vm1, 1, %v471_v63  ;;  %vm299_vm2 = vc.u32 %v297_v4, %v293_v3  ;;  %v301_v62 = vadd.s32 %v297_v4, %v293_v3  ;;  %v251_v16 = vsel %vm245_vm12, %v248_v59, %v250_v1 }
  0x4e   :  { %v159_v10 = vsub.s32 %v155_v44, %v158_v5  ;;  %v280_v13 = vadd.s32 %v278_v51, %v276_v6  ;;  %v300_v32 = vsel %vm299_vm2, 1, %v471_v63  ;;  %v305_v25 = vmul.u32 %v511_v56, %v251_v16 }
  0x4f   :  { %v302_v53 = vadd.s32 %v300_v32, %v298_v8  ;;  %v151_v63 = vadd.s32 %v573_v12, %v587_v17  ;;  %v181_v50 = vsub.s32 4, %v614_v0  ;;  %vm59_vm7 = vcmp.lt.s32.totalorder %v489_v22, 0 }
  0x50   :  { %vm160_vm3 = vcmp.lt.s32.totalorder %v159_v10, 0  ;;  %v161_v14 = vsub.s32 0, %v159_v10  ;;  %v281_v15 = vadd.s32 %v280_v13, %v270_v31  ;;  %vm636_vm8 = vcmp.le.f32.partialorder %v57_v24, 0.7853982 }
  0x51   :  { %v303_v19 = vadd.s32 %v302_v53, %v292_v7  ;;  %v182_v59 = vsel %vm59_vm7, %v181_v50, %v614_v0  ;;  %vm214_vm11 = vcmp.lt.s32.totalorder %v491_v23, 0  ;;  %vm650_vm13 = vcmp.le.f32.partialorder %v212_v26, 0.7853982 }
  0x52   :  { %v162_v20 = vsel %vm160_vm3, %v161_v14, %v159_v10  ;;  %v282_v42 = vadd.s32 %v281_v15, %v272_v11  ;;  %v184_v1 = vsel %vm636_vm8, 0, %v182_v59  ;;  %vm200_vm15 = vweird.f32 %v489_v22 }
  0x53   :  { %v163_v18 = vclz %v162_v20  ;;  %v304_v21 = vadd.s32 %v303_v19, %v294_v43  ;;  %v201_v7 = vadd.s32 3, %v184_v1  ;;  %vm369_vm0 = vcmask 261120  }
  0x54   :  { %vm307_vm4 = vc.u32 %v282_v42, %v301_v62  ;;  %v306_v55 = vadd.s32 %v301_v62, %v282_v42 }
  0x55   :  { %v392_v27 = vadd.s32 4294967294, %v163_v18  ;;  %v308_v28 = vadd.s32 1, %v304_v21  ;;  %v202_v14 = vand.u32 3, %v201_v7 }
  0x57   :  { %vm393_vm5 = vcmp.lt.s32.totalorder %v392_v27, 0  ;;  %v309_v29 = vsel %vm307_vm4, %v308_v28, %v304_v21  ;;  %vm207_vm10 = vcmp.eq.s32.totalorder %v202_v14, 2  ;;  %vm204_vm12 = vcmp.eq.s32.totalorder %v202_v14, 0 }
  0x58   :  { %v166_v30 = vsel %vm393_vm5, 0, %v392_v27  ;;  %v310_v33 = vadd.s32 %v309_v29, %v305_v25  ;;  %vm203_vm14 = vcmp.lt.s32.totalorder %v202_v14, 2  ;;  %vm355_vm4 = vweird.f32 %v491_v23 }
  0x59   :  { %v167_v34 = vsub.s32 32, %v166_v30  ;;  %v168_v9 = vshll.u32 %v159_v10, %v166_v30  ;;  %v171_v35 = vsub.s32 4294967266, %v166_v30 }
  0x5a   :  { %v311_v36 = vadd.s32 536870912, %v310_v33 }
  0x5b   :  { %v169_v37 = vshrl.u32 %v151_v63, %v167_v34  ;;  %v172_v39 = vadd.s32 127, %v171_v35 }
  0x5c   :  { %v629_v40 = vshrl.u32 %v311_v36, 30 }
  0x5d   :  { %v170_v41 = vor.u32 %v169_v37, %v168_v9  ;;  %v173_v56 = vshll.u32 %v172_v39, 23  ;;  %v41_v9 = vld [vmem:[#allocation2] sm:$0xff] }
  0x5e   :  { %v313_v38 = vshll.u32 %v629_v40, 30  ;;  %v336_v28 = vsub.s32 4, %v629_v40 }
  0x5f   :  { %v174_v44 = vor.u32 4788187, %v173_v56  ;;  %v177_v46 = vcvt.s32.f32 %v170_v41 }
  0x60   :  { %v314_v47 = vsub.s32 %v310_v33, %v313_v38  ;;  %v337_v36 = vsel %vm214_vm11, %v336_v28, %v629_v40 }
  0x61   :  { %v175_v12 = vand.u32 2147483647, %v174_v44  ;;  %v339_v56 = vsel %vm650_vm13, 0, %v337_v36 }
  0x62   :  { %vm315_vm6 = vcmp.lt.s32.totalorder %v314_v47, 0  ;;  %v316_v17 = vsub.s32 0, %v314_v47 }
  0x63   :  { %v178_v48 = vmul.f32 %v177_v46, %v175_v12  ;;  %v356_v12 = vadd.s32 3, %v339_v56 }
  0x64   :  { %v317_v52 = vsel %vm315_vm6, %v316_v17, %v314_v47 }
  0x65   :  { %v179_v57 = vxor.u32 2147483648, %v178_v48  ;;  %v318_v58 = vclz %v317_v52  ;;  %v357_v52 = vand.u32 3, %v356_v12 }
  0x67   :  { %v180_v49 = vsel %vm59_vm7, %v179_v57, %v178_v48  ;;  %v395_v61 = vadd.s32 4294967294, %v318_v58  ;;  %vm362_vm1 = vcmp.eq.s32.totalorder %v357_v52, 2  ;;  %vm359_vm2 = vcmp.eq.s32.totalorder %v357_v52, 0 }
  0x68   :  { %v183_v45 = vsel %vm636_vm8, %v489_v22, %v180_v49  ;;  %vm358_vm3 = vcmp.lt.s32.totalorder %v357_v52, 2 }
  0x69   :  { %v185_v3 = vmul.f32 %v183_v45, %v183_v45  ;;  %vm396_vm9 = vcmp.lt.s32.totalorder %v395_v61, 0 }
  0x6a   :  { %v321_v24 = vsel %vm396_vm9, 0, %v395_v61 }
  0x6b   :  { %v186_v2 = vmul.f32 -0.001358992, %v185_v3  ;;  %v193_v60 = vmul.f32 -0.00019511016, %v185_v3  ;;  %v322_v4 = vsub.s32 32, %v321_v24  ;;  %v323_v5 = vshll.u32 %v314_v47, %v321_v24 }
  0x6c   :  { %v326_v31 = vsub.s32 4294967266, %v321_v24 }
  0x6d   :  { %v187_v6 = vadd.f32 0.041655596, %v186_v2  ;;  %v194_v51 = vadd.f32 0.008332121, %v193_v60  ;;  %v324_v0 = vshrl.u32 %v306_v55, %v322_v4  ;;  %v42_v55 = vld [vmem:[#allocation2 + $0x8] sm:$0xff] }
  0x6e   :  { %v327_v8 = vadd.s32 127, %v326_v31 }
  0x6f   :  { %v188_v10 = vmul.f32 %v187_v6, %v185_v3  ;;  %v195_v11 = vmul.f32 %v194_v51, %v185_v3  ;;  %v325_v13 = vor.u32 %v324_v0, %v323_v5 }
  0x70   :  { %v328_v32 = vshll.u32 %v327_v8, 23 }
  0x71   :  { %v189_v43 = vadd.f32 -0.4999988, %v188_v10  ;;  %v196_v53 = vadd.f32 -0.16666654, %v195_v11  ;;  %v332_v62 = vcvt.s32.f32 %v325_v13 }
  0x72   :  { %v329_v15 = vor.u32 4788187, %v328_v32 }
  0x73   :  { %v190_v16 = vmul.f32 %v189_v43, %v185_v3  ;;  %v197_v19 = vmul.f32 %v196_v53, %v185_v3 }
  0x74   :  { %v330_v20 = vand.u32 2147483647, %v329_v15 }
  0x75   :  { %v191_v42 = vadd.f32 1.0, %v190_v16  ;;  %v198_v18 = vadd.f32 1.0, %v197_v19 }
  0x76   :  { %v333_v21 = vmul.f32 %v332_v62, %v330_v20 }
  0x77   :  { %v199_v25 = vmul.f32 %v198_v18, %v183_v45  ;;  %v208_v27 = vxor.u32 2147483648, %v191_v42 }
  0x78   :  { %v334_v29 = vxor.u32 2147483648, %v333_v21 }
  0x79   :  { %v205_v30 = vxor.u32 2147483648, %v199_v25  ;;  %v209_v33 = vsel %vm207_vm10, %v208_v27, %v199_v25 }
  0x7a   :  { %v335_v34 = vsel %vm214_vm11, %v334_v29, %v333_v21 }
  0x7b   :  { %v206_v35 = vsel %vm204_vm12, %v191_v42, %v205_v30  ;;  %v338_v37 = vsel %vm650_vm13, %v491_v23, %v335_v34 }
  0x7c   :  { %v210_v39 = vsel %vm203_vm14, %v206_v35, %v209_v33  ;;  %v340_v26 = vmul.f32 %v338_v37, %v338_v37 }
  0x7d   :  { %v211_v41 = vsel %vm200_vm15, nan, %v210_v39 }
  0x7e   :  { %v341_v38 = vmul.f32 -0.001358992, %v340_v26  ;;  %v348_v44 = vmul.f32 -0.00019511016, %v340_v26  ;;  %v367_v46 = vadd.f32 %v211_v41, %v41_v9 }
  0x80   :  { %v342_v22 = vadd.f32 0.041655596, %v341_v38  ;;  %v349_v47 = vadd.f32 0.008332121, %v348_v44  ;;  %370 = vst.msk [vmem:[#allocation5] sm:$0xff] %vm369_vm0, %v367_v46 }
  0x82   :  { %v343_v40 = vmul.f32 %v342_v22, %v340_v26  ;;  %v350_v17 = vmul.f32 %v349_v47, %v340_v26 }
  0x84   :  { %v344_v48 = vadd.f32 -0.4999988, %v343_v40  ;;  %v351_v50 = vadd.f32 -0.16666654, %v350_v17 }
  0x86   :  { %v345_v54 = vmul.f32 %v344_v48, %v340_v26  ;;  %v352_v57 = vmul.f32 %v351_v50, %v340_v26 }
  0x88   :  { %v346_v58 = vadd.f32 1.0, %v345_v54  ;;  %v353_v49 = vadd.f32 1.0, %v352_v57 }
  0x8a   :  { %v354_v59 = vmul.f32 %v353_v49, %v338_v37  ;;  %v363_v61 = vxor.u32 2147483648, %v346_v58 }
  0x8c   :  { %v360_v45 = vxor.u32 2147483648, %v354_v59  ;;  %v364_v3 = vsel %vm362_vm1, %v363_v61, %v354_v59 }
  0x8e   :  { %v361_v1 = vsel %vm359_vm2, %v346_v58, %v360_v45 }
  0x8f   :  { %v365_v24 = vsel %vm358_vm3, %v361_v1, %v364_v3 }
  0x90   :  { %v366_v2 = vsel %vm355_vm4, nan, %v365_v24 }
  0x91   :  { %v368_v60 = vadd.f32 %v366_v2, %v42_v55 }
  0x93   :  { %371 = vst.msk [vmem:[#allocation5 + $0x8] sm:$0xff] %vm369_vm0, %v368_v60 }
  0x94   :  { %384 = dma.vmem_to_hbm [thread:$0]  %s377_s13, 256, %s379_s16, [#allocation4], %s463_s11, %s463_s11, %s464_s12  }
  0x95   :  { %460 = dma.done.wait [#allocation4], 256  }
  0x96   :  { %461 = vsyncadd [#allocation4], 4294967040 }
  0x97   :  { %389 = vsyncpa [#allocation3], 1 }
  0x98   :  { %390 = vsyncpa [#allocation4], 1 }

</bundles_post_ra>
